<compile_context>
chip_gen: v7x
topology: tpu7x:2x2x1
jax: 0.10.0
libtpu: 0.0.40
codegen_flags: <defaults>
</compile_context>

<pallas_src>
from functools import partial

import jax
import jax.numpy as jnp
from jax.experimental import pallas as pl
from jax.experimental.pallas import tpu as pltpu

_NEG_BIG = -1e30   # logit bias for padded class columns -> exp() underflows to 0
_PAD = 128         # lane-dense hidden / class dimension


def _round_up(x, n):
    return ((x + n - 1) // n) * n


def _net_softmax_kernel(x_ref, w1_ref, w2_ref, bias_ref, out_ref):
    x = x_ref[...]                                                     # (TM, Dp)

    # model: Linear -> ReLU -> Linear   (one MXU matmul per layer, f32 acc)
    h = jnp.dot(x, w1_ref[...], preferred_element_type=jnp.float32)    # (TM, 128)
    h = jnp.maximum(h + bias_ref[0:1, :], 0.0)
    logits = jnp.dot(h, w2_ref[...], preferred_element_type=jnp.float32)
    logits = logits + bias_ref[1:2, :]                                 # (TM, 128)

    # softmax over dim=1; padded class columns hold -1e30 -> zero probability.
    # XLU (max/sum) and EUP (exp/reciprocal) ride on slots that are idle next
    # to the MXU work; one Newton step restores full f32 accuracy of 1/s.
    m = jnp.max(logits, axis=1, keepdims=True)
    e = jnp.exp(logits - m)
    s = jnp.sum(e, axis=1, keepdims=True)
    inv = pl.reciprocal(s, approx=True)            # EUP seed
    inv = inv * (2.0 - s * inv)                    # Newton refine (~f32 exact)
    out_ref[...] = e * inv


def prepare_params(params, d_in):
    """One-time packing of the MLP weights into lane-dense padded arrays.

    Extra hidden units are zero (ReLU(0)=0 -> contribute nothing); extra class
    columns get a -1e30 bias so softmax gives them zero probability.
    """
    w1, b1, w2, b2 = params
    hidden = w1.shape[1]
    num_classes = w2.shape[1]
    assert hidden <= _PAD and num_classes <= _PAD
    d_pad = _round_up(d_in, 128)

    w1p = jnp.zeros((d_pad, _PAD), jnp.float32).at[:d_in, :hidden].set(
        w1.astype(jnp.float32))
    w2p = jnp.zeros((_PAD, _PAD), jnp.float32).at[:hidden, :num_classes].set(
        w2.astype(jnp.float32))
    b1p = jnp.zeros((_PAD,), jnp.float32).at[:hidden].set(b1.astype(jnp.float32))
    b2p = jnp.full((_PAD,), _NEG_BIG, jnp.float32).at[:num_classes].set(
        b2.astype(jnp.float32))
    bias = jnp.stack([b1p, b2p], axis=0)                               # (2, 128)
    return w1p, w2p, bias, num_classes


def _pick_batch_tile(B):
    """Batch tile: >=2 grid steps when B>=16 (v7x megacore), cap at 512 rows."""
    if B >= 16:
        return min(_round_up((B + 1) // 2, 8), 512)
    return _round_up(B, 8)


@partial(jax.jit, static_argnames=("num_classes",))
def net_softmax_forward(x_nchw, w1p, w2p, bias, num_classes):
    """Fused Pallas forward for Net_softmax.  x_nchw: (B, C, H, W) float32."""
    B = x_nchw.shape[0]
    x = x_nchw.reshape(B, -1).astype(jnp.float32)                      # (B, D)
    D = x.shape[1]
    D_pad = w1p.shape[0]
    if D != D_pad:                       # only pad x when D needs lane padding
        x = jnp.pad(x, ((0, 0), (0, D_pad - D)))

    TM = _pick_batch_tile(B)
    grid = (pl.cdiv(B, TM),)             # ragged final block masked by Pallas

    out = pl.pallas_call(
        _net_softmax_kernel,
        out_shape=jax.ShapeDtypeStruct((B, _PAD), jnp.float32),
        grid=grid,
        in_specs=[
            pl.BlockSpec((TM, D_pad), lambda i: (i, 0)),     # x tile per step
            pl.BlockSpec((D_pad, _PAD), lambda i: (0, 0)),   # W1 (resident)
            pl.BlockSpec((_PAD, _PAD), lambda i: (0, 0)),    # W2 (resident)
            pl.BlockSpec((2, _PAD), lambda i: (0, 0)),       # packed biases
        ],
        out_specs=pl.BlockSpec((TM, _PAD), lambda i: (i, 0)),
        compiler_params=pltpu.CompilerParams(
            dimension_semantics=("parallel",)),
    )(x, w1p, w2p, bias)

    return out[:, :num_classes]


def _init_mlp(key, d_in, d_hidden, d_out):
    """Deterministic init of the wrapped 2-layer MLP; weights as (in, out)."""
    k1, k2, k3, k4 = jax.random.split(key, 4)
    w1 = jax.random.normal(k1, (d_in, d_hidden), jnp.float32) * 0.05
    b1 = jax.random.normal(k2, (d_hidden,), jnp.float32) * 0.05
    w2 = jax.random.normal(k3, (d_hidden, d_out), jnp.float32) * 0.05
    b2 = jax.random.normal(k4, (d_out,), jnp.float32) * 0.05
    return w1, b1, w2, b2


def _reference(x_nchw, params):
    """Pure-JAX reference matching the PyTorch forward semantics."""
    B = x_nchw.shape[0]
    x = x_nchw.reshape(B, -1)
    w1, b1, w2, b2 = params
    logits = jnp.maximum(x @ w1 + b1, 0.0) @ w2 + b2
    return jax.nn.softmax(logits, axis=1)


if __name__ == "__main__":
    # Small shapes consistent with the forward: NCHW image in, class probs out.
    B, C, H, W = 2, 4, 16, 16
    D = C * H * W
    HIDDEN = 32
    NUM_CLASSES = 10

    key = jax.random.PRNGKey(0)
    kx, km = jax.random.split(key, 2)

    x = jax.random.normal(kx, (B, C, H, W), jnp.float32)
    params = _init_mlp(km, D, HIDDEN, NUM_CLASSES)

    # One-time weight packing (hoisted out of the per-call forward).
    w1p, w2p, bias, n_cls = prepare_params(params, D)

    out = net_softmax_forward(x, w1p, w2p, bias, n_cls)
    out = jax.block_until_ready(out)

    ref = _reference(x, params)
    assert out.shape == (B, NUM_CLASSES)
    assert jnp.allclose(out.sum(axis=1), 1.0, atol=1e-5), "rows must sum to 1"
    assert jnp.allclose(out, ref, atol=1e-4, rtol=1e-4), "mismatch vs reference"

    # Second check with a larger batch to exercise the multi-step parallel grid.
    B2 = 32
    x2 = jax.random.normal(jax.random.PRNGKey(1), (B2, C, H, W), jnp.float32)
    out2 = jax.block_until_ready(net_softmax_forward(x2, w1p, w2p, bias, n_cls))
    ref2 = _reference(x2, params)
    assert out2.shape == (B2, NUM_CLASSES)
    assert jnp.allclose(out2, ref2, atol=1e-4, rtol=1e-4), "batch-32 mismatch"

    print("KERNEL_OK")
</pallas_src>

<mosaic_0001>
module attributes {stable_mosaic.version = 11 : i64} {
  func.func @_net_softmax_kernel(%arg0: i32, %arg1: memref<8x1024xf32, #tpu.memory_space<vmem>>, %arg2: memref<1024x128xf32, #tpu.memory_space<vmem>>, %arg3: memref<128x128xf32, #tpu.memory_space<vmem>>, %arg4: memref<2x128xf32, #tpu.memory_space<vmem>>, %arg5: memref<8x128xf32, #tpu.memory_space<vmem>>) attributes {dimension_semantics = [#tpu.dimension_semantics<parallel>], iteration_bounds = array<i64: 1>, scalar_prefetch = 0 : i64, scratch_operands = 0 : i64, tpu.core_type = #tpu.core_type<tc>, window_params = [{transform_indices = @transform_0, window_bounds = array<i64: 8, 1024>}, {pipeline_mode = #tpu.pipeline_mode<synchronous>, transform_indices = @transform_1, window_bounds = array<i64: 1024, 128>}, {pipeline_mode = #tpu.pipeline_mode<synchronous>, transform_indices = @transform_2, window_bounds = array<i64: 128, 128>}, {pipeline_mode = #tpu.pipeline_mode<synchronous>, transform_indices = @transform_3, window_bounds = array<i64: 2, 128>}, {transform_indices = @transform_4, window_bounds = array<i64: 8, 128>}]} {
    %c0 = arith.constant 0 : index
    %c0_0 = arith.constant 0 : index
    %0 = vector.load %arg1[%c0, %c0_0] : memref<8x1024xf32, #tpu.memory_space<vmem>>, vector<8x1024xf32>
    %c0_1 = arith.constant 0 : index
    %c0_2 = arith.constant 0 : index
    %1 = vector.load %arg2[%c0_1, %c0_2] : memref<1024x128xf32, #tpu.memory_space<vmem>>, vector<1024x128xf32>
    %cst = arith.constant dense<0.000000e+00> : vector<8x128xf32>
    %2 = tpu.matmul %0, %1, %cst {dimension_numbers = #tpu.dot_dimension_numbers<[1], [0], [0], [1], [0, 0, 1, 1], [], []>} : vector<8x1024xf32>, vector<1024x128xf32>, vector<8x128xf32> -> vector<8x128xf32>
    %c0_3 = arith.constant 0 : index
    %c0_4 = arith.constant 0 : index
    %3 = vector.load %arg4[%c0_3, %c0_4] : memref<2x128xf32, #tpu.memory_space<vmem>>, vector<1x128xf32>
    %4 = vector.broadcast %3 : vector<1x128xf32> to vector<8x128xf32>
    %5 = arith.addf %2, %4 : vector<8x128xf32>
    %cst_5 = arith.constant 0.000000e+00 : f32
    %6 = vector.broadcast %cst_5 : f32 to vector<8x128xf32>
    %7 = arith.maximumf %5, %6 : vector<8x128xf32>
    %c0_6 = arith.constant 0 : index
    %c0_7 = arith.constant 0 : index
    %8 = vector.load %arg3[%c0_6, %c0_7] : memref<128x128xf32, #tpu.memory_space<vmem>>, vector<128x128xf32>
    %cst_8 = arith.constant dense<0.000000e+00> : vector<8x128xf32>
    %9 = tpu.matmul %7, %8, %cst_8 {dimension_numbers = #tpu.dot_dimension_numbers<[1], [0], [0], [1], [0, 0, 1, 1], [], []>} : vector<8x128xf32>, vector<128x128xf32>, vector<8x128xf32> -> vector<8x128xf32>
    %c1 = arith.constant 1 : index
    %c0_9 = arith.constant 0 : index
    %10 = vector.load %arg4[%c1, %c0_9] : memref<2x128xf32, #tpu.memory_space<vmem>>, vector<1x128xf32>
    %11 = vector.broadcast %10 : vector<1x128xf32> to vector<8x128xf32>
    %12 = arith.addf %9, %11 : vector<8x128xf32>
    %cst_10 = arith.constant dense<0xFF800000> : vector<8xf32>
    %13 = vector.multi_reduction <maximumf>, %12, %cst_10 [1] : vector<8x128xf32> to vector<8xf32>
    %14 = vector.shape_cast %13 : vector<8xf32> to vector<8x1xf32>
    %15 = vector.broadcast %14 : vector<8x1xf32> to vector<8x128xf32>
    %16 = arith.subf %12, %15 : vector<8x128xf32>
    %17 = math.exp %16 : vector<8x128xf32>
    %cst_11 = arith.constant dense<0.000000e+00> : vector<8xf32>
    %18 = vector.multi_reduction <add>, %17, %cst_11 [1] : vector<8x128xf32> to vector<8xf32>
    %19 = vector.shape_cast %18 : vector<8xf32> to vector<8x1xf32>
    %20 = tpu.reciprocal %19 {approx = true} : vector<8x1xf32> -> vector<8x1xf32>
    %21 = arith.mulf %19, %20 : vector<8x1xf32>
    %cst_12 = arith.constant 2.000000e+00 : f32
    %22 = vector.broadcast %cst_12 : f32 to vector<8x1xf32>
    %23 = arith.subf %22, %21 : vector<8x1xf32>
    %24 = arith.mulf %20, %23 : vector<8x1xf32>
    %25 = vector.broadcast %24 : vector<8x1xf32> to vector<8x128xf32>
    %26 = arith.mulf %17, %25 : vector<8x128xf32>
    %c0_13 = arith.constant 0 : index
    %c0_14 = arith.constant 0 : index
    %27 = vector.load %arg5[%c0_13, %c0_14] : memref<8x128xf32, #tpu.memory_space<vmem>>, vector<8x128xf32>
    tpu.vector_store %arg5[%c0_13, %c0_14], %26 {strides = array<i32>} : memref<8x128xf32, #tpu.memory_space<vmem>>, vector<8x128xf32>,
    return
  }
  func.func @transform_0(%arg0: i32) -> (i32, i32) {
    %c0_i32 = arith.constant 0 : i32
    %c0_i32_0 = arith.constant 0 : i32
    return %arg0, %c0_i32 : i32, i32
  }
  func.func @transform_1(%arg0: i32) -> (i32, i32) {
    %c0_i32 = arith.constant 0 : i32
    %c0_i32_0 = arith.constant 0 : i32
    %c0_i32_1 = arith.constant 0 : i32
    return %c0_i32, %c0_i32_0 : i32, i32
  }
  func.func @transform_2(%arg0: i32) -> (i32, i32) {
    %c0_i32 = arith.constant 0 : i32
    %c0_i32_0 = arith.constant 0 : i32
    %c0_i32_1 = arith.constant 0 : i32
    return %c0_i32, %c0_i32_0 : i32, i32
  }
  func.func @transform_3(%arg0: i32) -> (i32, i32) {
    %c0_i32 = arith.constant 0 : i32
    %c0_i32_0 = arith.constant 0 : i32
    %c0_i32_1 = arith.constant 0 : i32
    return %c0_i32, %c0_i32_0 : i32, i32
  }
  func.func @transform_4(%arg0: i32) -> (i32, i32) {
    %c0_i32 = arith.constant 0 : i32
    %c0_i32_0 = arith.constant 0 : i32
    return %arg0, %c0_i32 : i32, i32
  }
}

</mosaic_0001>

<bundles_post_ra>
// kernel: net_softmax_forward.1
= control target key start
LH: loop header
LB: loop body
LE: loop exit
PB: predicated region body
PF: predicated region fallthrough
CT: control target
= control target key end

     0   :  { %9 = vsyncpa [#allocation3], 0  ;;  %s1230_s0 = inlined_call_operand.vmem [shape: f32[2,1024], index: 0, kind: input, shape index: {}]   ;;  %s1231_s1 = inlined_call_operand.hbm [shape: f32[1024,128], index: 1, kind: input, shape index: {}]   ;;  %s1232_s2 = inlined_call_operand.vmem [shape: f32[128,128], index: 2, kind: input, shape index: {}]   ;;  %s1233_s3 = inlined_call_operand.vmem [shape: f32[2,128], index: 3, kind: input, shape index: {}]   ;;  %s1234_s4 = inlined_call_operand.hbm [shape: f32[2,128], index: 4, kind: output, shape index: {}]  }
   0x1   :  { %10 = vsyncpa [#allocation4], 0  ;;  %s1083_s15 = smov [#allocation2]   ;;  %s1035_s19 = scalar_lea.hbm %s1231_s1, 16384 }
   0x2   :  { %s18_s16 = sshll.u32 %s1083_s15, 4  ;;  %p1036_p0 = scmp.ne.s32.totalorder %s1231_s1, %s1035_s19  ;;  %s19_s16 = int_to_ptr.vmem [resolvable:$true] %s18_s16 }
   0x3   :  { %p1039_p1 = scmp.lt.u32.totalorder %s1035_s19, %s1231_s1 }
   0x5   :  { %p1041_p2 = pnand %p1039_p1, %p1036_p0 }
   0x7   :  { %1044 = shalt.err (!%p1041_p2)
}
   0x8   :  { %s1045_s24 = scalar_lea.vmem %s19_s16, 16384  ;;  %p1050_p4 = scmp.lt.s32.totalorder %s19_s16, %s19_s16 }
   0x9   :  { %p1046_p3 = scmp.ne.s32.totalorder %s19_s16, %s1045_s24  ;;  %p1051_p5 = scmp.lt.s32.totalorder %s1045_s24, %s1045_s24 }
   0xb   :  { %p1052_p6 = por %p1051_p5, %p1050_p4 }
   0xd   :  { %p1053_p7 = pnand %p1052_p6, %p1046_p3 }
   0xf   :  { %1056 = shalt.err (!%p1053_p7)
}
  0x10   :  { %s1084_s25 = smov 128   ;;  %s1085_s26 = smov 8  }
  0x11   :  { %24 = dma.hbm_to_vmem [thread:$0]  %s1231_s1, 16384, %s19_s16, [#allocation3], %s1084_s25, %s1084_s25, %s1085_s26  }
  0x12   :  { %1079 = dma.done.wait [#allocation3], 16384  }
  0x13   :  { %1080 = vsyncadd [#allocation3], 4294950912  ;;  %v56_v0 = vld [vmem:[#allocation2 + $0x80] sm:$0xff]  ;;  %v57_v1 = vld [vmem:[#allocation2 + $0x88] sm:$0xff]  ;;  %v1086_v51 = vmov 1983009808   ;;  %v188_v53 = vlaneseq }
  0x14   :  { %v40_v2 = vld [vmem:[#allocation2] sm:$0xff]  ;;  %v857_v3 = vpack.c.bf16 %v57_v1, %v56_v0  ;;  %v41_v4 = vld [vmem:[#allocation2 + $0x8] sm:$0xff]  ;;  %v58_v11 = vld [vmem:[#allocation2 + $0x90] sm:$0xff]  ;;  %v186_v52 = vunpack.c.l.s4 %v1086_v51  ;;  %vm1088_vm0 = vmmov 0  }
  0x15   :  { %v88_v5 = vld [vmem:[#allocation2 + $0x180] sm:$0xff]  ;;  %v89_v6 = vld [vmem:[#allocation2 + $0x188] sm:$0xff]  ;;  %v859_v7 = vpack.c.bf16 %v41_v4, %v40_v2  ;;  %v59_v13 = vld [vmem:[#allocation2 + $0x98] sm:$0xff] }
  0x16   :  { %v889_v8 = vpack.c.bf16 %v89_v6, %v88_v5  ;;  %v72_v9 = vld [vmem:[#allocation2 + $0x100] sm:$0xff]  ;;  %v73_v10 = vld [vmem:[#allocation2 + $0x108] sm:$0xff]  ;;  %858 = vmatprep.subr.bf16.mxu0 %v857_v3  ;;  %v42_v14 = vld [vmem:[#allocation2 + $0x10] sm:$0xff]  ;;  %v861_v16 = vpack.c.bf16 %v59_v13, %v58_v11  ;;  %v187_v2 = vunpack.c.0.s8 %v186_v52  ;;  %v189_v3 = vshrl.u32 %v188_v53, 7 }
  0x17   :  { %v891_v12 = vpack.c.bf16 %v73_v10, %v72_v9  ;;  %v43_v15 = vld [vmem:[#allocation2 + $0x18] sm:$0xff]  ;;  %860 = vmatpush3.bf16.msra.mxu0 %v859_v7  ;;  %v90_v18 = vld [vmem:[#allocation2 + $0x190] sm:$0xff]  ;;  %v60_v23 = vld [vmem:[#allocation2 + $0xa0] sm:$0xff] }
  0x18   :  { %890 = vmatprep.subr.bf16.mxu1 %v889_v8  ;;  %v863_v17 = vpack.c.bf16 %v43_v15, %v42_v14  ;;  %v91_v19 = vld [vmem:[#allocation2 + $0x198] sm:$0xff]  ;;  %v74_v20 = vld [vmem:[#allocation2 + $0x110] sm:$0xff]  ;;  %v61_v24 = vld [vmem:[#allocation2 + $0xa8] sm:$0xff]  ;;  %862 = vmatprep.subr.bf16.mxu0 %v861_v16 }
  0x19   :  { %892 = vmatpush3.bf16.msra.mxu1 %v891_v12  ;;  %v893_v21 = vpack.c.bf16 %v91_v19, %v90_v18  ;;  %v75_v22 = vld [vmem:[#allocation2 + $0x118] sm:$0xff]  ;;  %v865_v26 = vpack.c.bf16 %v61_v24, %v60_v23  ;;  %v44_v27 = vld [vmem:[#allocation2 + $0x20] sm:$0xff]  ;;  %v45_v28 = vld [vmem:[#allocation2 + $0x28] sm:$0xff] }
  0x1a   :  { %v895_v25 = vpack.c.bf16 %v75_v22, %v74_v20  ;;  %v92_v29 = vld [vmem:[#allocation2 + $0x1a0] sm:$0xff]  ;;  %v93_v30 = vld [vmem:[#allocation2 + $0x1a8] sm:$0xff]  ;;  %v867_v33 = vpack.c.bf16 %v45_v28, %v44_v27  ;;  %v62_v35 = vld [vmem:[#allocation2 + $0xb0] sm:$0xff] }
  0x1b   :  { %894 = vmatprep.subr.bf16.mxu1 %v893_v21  ;;  %v76_v31 = vld [vmem:[#allocation2 + $0x120] sm:$0xff]  ;;  %v77_v32 = vld [vmem:[#allocation2 + $0x128] sm:$0xff]  ;;  %864 = vmatpush3.bf16.msra.mxu0 %v863_v17  ;;  %v897_v34 = vpack.c.bf16 %v93_v30, %v92_v29  ;;  %v63_v36 = vld [vmem:[#allocation2 + $0xb8] sm:$0xff]  ;;  %v1130_v21 = vsub.s32 %v187_v2, %v189_v3 }
  0x1c   :  { %v46_v37 = vld [vmem:[#allocation2 + $0x30] sm:$0xff]  ;;  %866 = vmatprep.subr.bf16.mxu0 %v865_v26  ;;  %v899_v38 = vpack.c.bf16 %v77_v32, %v76_v31  ;;  %v869_v39 = vpack.c.bf16 %v63_v36, %v62_v35  ;;  %v47_v40 = vld [vmem:[#allocation2 + $0x38] sm:$0xff]  ;;  %v64_v46 = vld [vmem:[#allocation2 + $0xc0] sm:$0xff] }
  0x1d   :  { %896 = vmatpush3.bf16.msra.mxu1 %v895_v25  ;;  %v94_v41 = vld [vmem:[#allocation2 + $0x1b0] sm:$0xff]  ;;  %v95_v42 = vld [vmem:[#allocation2 + $0x1b8] sm:$0xff]  ;;  %v65_v47 = vld [vmem:[#allocation2 + $0xc8] sm:$0xff]  ;;  %v871_v48 = vpack.c.bf16 %v47_v40, %v46_v37 }
  0x1e   :  { %898 = vmatprep.subr.bf16.mxu1 %v897_v34  ;;  %v901_v43 = vpack.c.bf16 %v95_v42, %v94_v41  ;;  %v78_v44 = vld [vmem:[#allocation2 + $0x130] sm:$0xff]  ;;  %v79_v45 = vld [vmem:[#allocation2 + $0x138] sm:$0xff]  ;;  %v96_v49 = vld [vmem:[#allocation2 + $0x1c0] sm:$0xff]  ;;  %v873_v55 = vpack.c.bf16 %v65_v47, %v64_v46 }
  0x1f   :  { %868 = vmatpush3.bf16.msra.mxu0 %v867_v33  ;;  %v97_v50 = vld [vmem:[#allocation2 + $0x1c8] sm:$0xff]  ;;  %v903_v54 = vpack.c.bf16 %v79_v45, %v78_v44  ;;  %v48_v56 = vld [vmem:[#allocation2 + $0x40] sm:$0xff]  ;;  %v66_v61 = vld [vmem:[#allocation2 + $0xd0] sm:$0xff] }
  0x20   :  { %870 = vmatprep.subr.bf16.mxu0 %v869_v39  ;;  %v49_v57 = vld [vmem:[#allocation2 + $0x48] sm:$0xff]  ;;  %v80_v58 = vld [vmem:[#allocation2 + $0x140] sm:$0xff]  ;;  %v905_v59 = vpack.c.bf16 %v97_v50, %v96_v49  ;;  %v67_v62 = vld [vmem:[#allocation2 + $0xd8] sm:$0xff] }
  0x21   :  { %900 = vmatpush3.bf16.msra.mxu1 %v899_v38  ;;  %v81_v60 = vld [vmem:[#allocation2 + $0x148] sm:$0xff]  ;;  %v98_v63 = vld [vmem:[#allocation2 + $0x1d0] sm:$0xff]  ;;  %v99_v0 = vld [vmem:[#allocation2 + $0x1d8] sm:$0xff]  ;;  %v875_v1 = vpack.c.bf16 %v49_v57, %v48_v56  ;;  %v877_v5 = vpack.c.bf16 %v67_v62, %v66_v61 }
  0x22   :  { %902 = vmatprep.subr.bf16.mxu1 %v901_v43  ;;  %v907_v4 = vpack.c.bf16 %v81_v60, %v80_v58  ;;  %v50_v6 = vld [vmem:[#allocation2 + $0x50] sm:$0xff]  ;;  %v51_v7 = vld [vmem:[#allocation2 + $0x58] sm:$0xff]  ;;  %v909_v9 = vpack.c.bf16 %v99_v0, %v98_v63  ;;  %v68_v11 = vld [vmem:[#allocation2 + $0xe0] sm:$0xff] }
  0x23   :  { %872 = vmatpush3.bf16.msra.mxu0 %v871_v48  ;;  %v82_v8 = vld [vmem:[#allocation2 + $0x150] sm:$0xff]  ;;  %v83_v10 = vld [vmem:[#allocation2 + $0x158] sm:$0xff]  ;;  %v69_v12 = vld [vmem:[#allocation2 + $0xe8] sm:$0xff]  ;;  %v879_v17 = vpack.c.bf16 %v51_v7, %v50_v6 }
  0x24   :  { %874 = vmatprep.subr.bf16.mxu0 %v873_v55  ;;  %v52_v13 = vld [vmem:[#allocation2 + $0x60] sm:$0xff]  ;;  %v53_v14 = vld [vmem:[#allocation2 + $0x68] sm:$0xff]  ;;  %v70_v20 = vld [vmem:[#allocation2 + $0xf0] sm:$0xff]  ;;  %v911_v22 = vpack.c.bf16 %v83_v10, %v82_v8  ;;  %v881_v23 = vpack.c.bf16 %v69_v12, %v68_v11 }
  0x25   :  { %904 = vmatpush3.bf16.msra.mxu1 %v903_v54  ;;  %v100_v15 = vld [vmem:[#allocation2 + $0x1e0] sm:$0xff]  ;;  %v101_v16 = vld [vmem:[#allocation2 + $0x1e8] sm:$0xff]  ;;  %v71_v24 = vld [vmem:[#allocation2 + $0xf8] sm:$0xff]  ;;  %v883_v30 = vpack.c.bf16 %v53_v14, %v52_v13 }
  0x26   :  { %906 = vmatprep.subr.bf16.mxu1 %v905_v59  ;;  %v84_v18 = vld [vmem:[#allocation2 + $0x160] sm:$0xff]  ;;  %v85_v19 = vld [vmem:[#allocation2 + $0x168] sm:$0xff]  ;;  %v913_v25 = vpack.c.bf16 %v101_v16, %v100_v15  ;;  %v102_v27 = vld [vmem:[#allocation2 + $0x1f0] sm:$0xff]  ;;  %v885_v35 = vpack.c.bf16 %v71_v24, %v70_v20 }
  0x27   :  { %876 = vmatpush3.bf16.msra.mxu0 %v875_v1  ;;  %v1019_v26 = vld [vmem:[%s1230_s0] ss:$16 sps:$4 sm:$0xff]   ;;  %v103_v28 = vld [vmem:[#allocation2 + $0x1f8] sm:$0xff]  ;;  %v1023_v32 = vld [vmem:[%s1230_s0 + $0x4] ss:$16 sps:$4 sm:$0xff]   ;;  %v915_v34 = vpack.c.bf16 %v85_v19, %v84_v18 }
  0x28   :  { %878 = vmatprep.subr.bf16.mxu0 %v877_v5  ;;  %v1021_v29 = vld [vmem:[%s1230_s0 + $0x20] ss:$16 sps:$4 sm:$0xff]   ;;  %v191_v31 = vrot.slane %v1019_v26, %v1130_v21  ;;  %v1024_v33 = vld [vmem:[%s1230_s0 + $0x24] ss:$16 sps:$4 sm:$0xff]   ;;  %v55_v37 = vld [vmem:[#allocation2 + $0x78] sm:$0xff]  ;;  %v917_v40 = vpack.c.bf16 %v103_v28, %v102_v27  ;;  %v198_v44 = vrot.slane %v1023_v32, %v1130_v21 }
  0x29   :  { %908 = vmatpush3.bf16.msra.mxu1 %v907_v4  ;;  %v54_v36 = vld [vmem:[#allocation2 + $0x70] sm:$0xff]  ;;  %v205_v39 = vrot.slane %v1021_v29, %v1130_v21  ;;  %v87_v41 = vld [vmem:[#allocation2 + $0x178] sm:$0xff]  ;;  %v120_v42 = vld [vmem:[#allocation2 + $0x280] sm:$0xff]  ;;  %v212_v45 = vrot.slane %v1024_v33, %v1130_v21 }
  0x2a   :  { %910 = vmatprep.subr.bf16.mxu1 %v909_v9  ;;  %v86_v38 = vld [vmem:[#allocation2 + $0x170] sm:$0xff]  ;;  %v121_v43 = vld [vmem:[#allocation2 + $0x288] sm:$0xff]  ;;  %v152_v47 = vld [vmem:[#allocation2 + $0x380] sm:$0xff]  ;;  %v887_v49 = vpack.c.bf16 %v55_v37, %v54_v36 }
  0x2b   :  { %880 = vmatpush3.bf16.msra.mxu0 %v879_v17  ;;  %v214_v46 = vcombine.high %v191_v31, %v205_v39  ;;  %v153_v48 = vld [vmem:[#allocation2 + $0x388] sm:$0xff]  ;;  %v216_v50 = vcombine.high %v198_v44, %v212_v45  ;;  %v919_v51 = vpack.c.bf16 %v87_v41, %v86_v38  ;;  %v921_v52 = vpack.c.bf16 %v121_v43, %v120_v42  ;;  %v104_v53 = vld [vmem:[#allocation2 + $0x200] sm:$0xff]  ;;  %v122_v58 = vld [vmem:[#allocation2 + $0x290] sm:$0xff] }
  0x2c   :  { %882 = vmatprep.subr.bf16.mxu0 %v881_v23  ;;  %v105_v54 = vld [vmem:[#allocation2 + $0x208] sm:$0xff]  ;;  %v136_v55 = vld [vmem:[#allocation2 + $0x300] sm:$0xff]  ;;  %v953_v56 = vpack.c.bf16 %v153_v48, %v152_v47  ;;  %v123_v59 = vld [vmem:[#allocation2 + $0x298] sm:$0xff]  ;;  %v213_v60 = vcombine.low %v191_v31, %v205_v39  ;;  %v215_v0 = vcombine.low %v198_v44, %v212_v45 }
  0x2d   :  { %912 = vmatpush3.bf16.msra.mxu1 %v911_v22  ;;  %325 = vmatprep.mubr.f32.mxu0 %v214_v46  ;;  %v137_v57 = vld [vmem:[#allocation2 + $0x308] sm:$0xff]  ;;  %v154_v61 = vld [vmem:[#allocation2 + $0x390] sm:$0xff]  ;;  %v155_v62 = vld [vmem:[#allocation2 + $0x398] sm:$0xff]  ;;  %v923_v63 = vpack.c.bf16 %v105_v54, %v104_v53  ;;  %v925_v2 = vpack.c.bf16 %v123_v59, %v122_v58 }
  0x2e   :  { %914 = vmatprep.subr.bf16.mxu1 %v913_v25  ;;  %395 = vmatprep.mubr.f32.mxu1 %v216_v50  ;;  %v955_v1 = vpack.c.bf16 %v137_v57, %v136_v55  ;;  %v106_v3 = vld [vmem:[#allocation2 + $0x210] sm:$0xff]  ;;  %v107_v4 = vld [vmem:[#allocation2 + $0x218] sm:$0xff]  ;;  %v957_v6 = vpack.c.bf16 %v155_v62, %v154_v61  ;;  %v124_v8 = vld [vmem:[#allocation2 + $0x2a0] sm:$0xff] }
  0x2f   :  { %884 = vmatpush3.bf16.msra.mxu0 %v883_v30  ;;  %v138_v5 = vld [vmem:[#allocation2 + $0x310] sm:$0xff]  ;;  %v139_v7 = vld [vmem:[#allocation2 + $0x318] sm:$0xff]  ;;  %v125_v9 = vld [vmem:[#allocation2 + $0x2a8] sm:$0xff]  ;;  %v927_v12 = vpack.c.bf16 %v107_v4, %v106_v3 }
  0x30   :  { %886 = vmatprep.subr.bf16.mxu0 %v885_v35  ;;  %v156_v10 = vld [vmem:[#allocation2 + $0x3a0] sm:$0xff]  ;;  %v157_v11 = vld [vmem:[#allocation2 + $0x3a8] sm:$0xff]  ;;  %v959_v13 = vpack.c.bf16 %v139_v7, %v138_v5  ;;  %v929_v14 = vpack.c.bf16 %v125_v9, %v124_v8  ;;  %v126_v20 = vld [vmem:[#allocation2 + $0x2b0] sm:$0xff] }
  0x31   :  { %916 = vmatpush3.bf16.msra.mxu1 %v915_v34  ;;  %v108_v15 = vld [vmem:[#allocation2 + $0x220] sm:$0xff]  ;;  %v109_v16 = vld [vmem:[#allocation2 + $0x228] sm:$0xff]  ;;  %v961_v18 = vpack.c.bf16 %v157_v11, %v156_v10  ;;  %v127_v22 = vld [vmem:[#allocation2 + $0x2b8] sm:$0xff] }
  0x32   :  { %918 = vmatprep.subr.bf16.mxu1 %v917_v40  ;;  %v140_v17 = vld [vmem:[#allocation2 + $0x320] sm:$0xff]  ;;  %v141_v19 = vld [vmem:[#allocation2 + $0x328] sm:$0xff]  ;;  %v158_v23 = vld [vmem:[#allocation2 + $0x3b0] sm:$0xff]  ;;  %v931_v25 = vpack.c.bf16 %v109_v16, %v108_v15  ;;  %v933_v27 = vpack.c.bf16 %v127_v22, %v126_v20 }
  0x33   :  { %888 = vmatpush3.bf16.msra.mxu0 %v887_v49  ;;  %v159_v24 = vld [vmem:[#allocation2 + $0x3b8] sm:$0xff]  ;;  %v963_v26 = vpack.c.bf16 %v141_v19, %v140_v17  ;;  %v110_v28 = vld [vmem:[#allocation2 + $0x230] sm:$0xff]  ;;  %v128_v33 = vld [vmem:[#allocation2 + $0x2c0] sm:$0xff] }
  0x34   :  { %922 = vmatprep.subr.bf16.mxu0 %v921_v52  ;;  %v111_v29 = vld [vmem:[#allocation2 + $0x238] sm:$0xff]  ;;  %v142_v30 = vld [vmem:[#allocation2 + $0x330] sm:$0xff]  ;;  %v965_v31 = vpack.c.bf16 %v159_v24, %v158_v23  ;;  %v129_v34 = vld [vmem:[#allocation2 + $0x2c8] sm:$0xff] }
  0x35   :  { %920 = vmatpush3.bf16.msra.mxu1 %v919_v51  ;;  %v143_v32 = vld [vmem:[#allocation2 + $0x338] sm:$0xff]  ;;  %v112_v35 = vld [vmem:[#allocation2 + $0x240] sm:$0xff]  ;;  %v113_v36 = vld [vmem:[#allocation2 + $0x248] sm:$0xff]  ;;  %v935_v40 = vpack.c.bf16 %v111_v29, %v110_v28  ;;  %v937_v45 = vpack.c.bf16 %v129_v34, %v128_v33  ;;  %v1087_v34 = vmov 0.0|0.0  }
  0x36   :  { %954 = vmatprep.subr.bf16.mxu1 %v953_v56  ;;  %326 = vmatmul.mubr.f32.vlgmr.msra.gmra.mrb[0].mxu0 %v213_v60  ;;  %v160_v37 = vld [vmem:[#allocation2 + $0x3c0] sm:$0xff]  ;;  %v161_v38 = vld [vmem:[#allocation2 + $0x3c8] sm:$0xff]  ;;  %v130_v42 = vld [vmem:[#allocation2 + $0x2d0] sm:$0xff]  ;;  %v967_v44 = vpack.c.bf16 %v143_v32, %v142_v30  ;;  %v939_v53 = vpack.c.bf16 %v113_v36, %v112_v35 }
  0x37   :  { %924 = vmatpush3.bf16.msra.mxu0 %v923_v63  ;;  %v144_v39 = vld [vmem:[#allocation2 + $0x340] sm:$0xff]  ;;  %v145_v41 = vld [vmem:[#allocation2 + $0x348] sm:$0xff]  ;;  %v131_v43 = vld [vmem:[#allocation2 + $0x2d8] sm:$0xff]  ;;  %v969_v48 = vpack.c.bf16 %v161_v38, %v160_v37 }
  0x38   :  { %396 = vmatmul.mubr.f32.vlgmr.msra.gmra.mrb[0].mxu1 %v215_v0  ;;  %926 = vmatprep.subr.bf16.mxu0 %v925_v2  ;;  %v162_v46 = vld [vmem:[#allocation2 + $0x3d0] sm:$0xff]  ;;  %v163_v47 = vld [vmem:[#allocation2 + $0x3d8] sm:$0xff]  ;;  %v971_v54 = vpack.c.bf16 %v145_v41, %v144_v39  ;;  %v941_v55 = vpack.c.bf16 %v131_v43, %v130_v42  ;;  %v133_v2 = vld [vmem:[#allocation2 + $0x2e8] sm:$0xff] }
  0x39   :  { %956 = vmatpush3.bf16.msra.mxu1 %v955_v1  ;;  %v1025_v49 = vld [vmem:[%s1230_s0 + $0x8] ss:$16 sps:$4 sm:$0xff]   ;;  %v1029_v51 = vld [vmem:[%s1230_s0 + $0xc] ss:$16 sps:$4 sm:$0xff]   ;;  %v114_v57 = vld [vmem:[#allocation2 + $0x250] sm:$0xff]  ;;  %v973_v63 = vpack.c.bf16 %v163_v47, %v162_v46 }
  0x3a   :  { %958 = vmatprep.subr.bf16.mxu1 %v957_v6  ;;  %v1027_v50 = vld [vmem:[%s1230_s0 + $0x28] ss:$16 sps:$4 sm:$0xff]   ;;  %v1030_v52 = vld [vmem:[%s1230_s0 + $0x2c] ss:$16 sps:$4 sm:$0xff]   ;;  %v227_v56 = vrot.slane %v1025_v49, %v1130_v21  ;;  %v146_v59 = vld [vmem:[#allocation2 + $0x350] sm:$0xff]  ;;  %v234_v61 = vrot.slane %v1029_v51, %v1130_v21 }
  0x3b   :  { %928 = vmatpush3.bf16.msra.mxu0 %v927_v12  ;;  %v115_v58 = vld [vmem:[#allocation2 + $0x258] sm:$0xff]  ;;  %v241_v60 = vrot.slane %v1027_v50, %v1130_v21  ;;  %v248_v62 = vrot.slane %v1030_v52, %v1130_v21  ;;  %v132_v1 = vld [vmem:[#allocation2 + $0x2e0] sm:$0xff]  ;;  %v165_v4 = vld [vmem:[#allocation2 + $0x3e8] sm:$0xff] }
  0x3c   :  { %930 = vmatprep.subr.bf16.mxu0 %v929_v14  ;;  %v147_v0 = vld [vmem:[#allocation2 + $0x358] sm:$0xff]  ;;  %v164_v3 = vld [vmem:[#allocation2 + $0x3e0] sm:$0xff]  ;;  %v943_v7 = vpack.c.bf16 %v115_v58, %v114_v57  ;;  %v945_v9 = vpack.c.bf16 %v133_v2, %v132_v1  ;;  %v117_v11 = vld [vmem:[#allocation2 + $0x268] sm:$0xff] }
  0x3d   :  { %960 = vmatpush3.bf16.msra.mxu1 %v959_v13  ;;  %v250_v5 = vcombine.high %v227_v56, %v241_v60  ;;  %v252_v6 = vcombine.high %v234_v61, %v248_v62  ;;  %v975_v8 = vpack.c.bf16 %v147_v0, %v146_v59  ;;  %v116_v10 = vld [vmem:[#allocation2 + $0x260] sm:$0xff]  ;;  %v977_v21 = vpack.c.bf16 %v165_v4, %v164_v3  ;;  %v149_v13 = vld [vmem:[#allocation2 + $0x368] sm:$0xff]  ;;  %v134_v14 = vld [vmem:[#allocation2 + $0x2f0] sm:$0xff] }
  0x3e   :  { %962 = vmatprep.subr.bf16.mxu1 %v961_v18  ;;  %v148_v12 = vld [vmem:[#allocation2 + $0x360] sm:$0xff]  ;;  %v135_v15 = vld [vmem:[#allocation2 + $0x2f8] sm:$0xff]  ;;  %v166_v16 = vld [vmem:[#allocation2 + $0x3f0] sm:$0xff]  ;;  %v947_v18 = vpack.c.bf16 %v117_v11, %v116_v10  ;;  %v249_v29 = vcombine.low %v227_v56, %v241_v60  ;;  %v251_v30 = vcombine.low %v234_v61, %v248_v62  ;;  %v1089_v56 = vmov 0.0  }
  0x3f   :  { %932 = vmatpush3.bf16.msra.mxu0 %v931_v25  ;;  %465 = vmatprep.mubr.f32.mxu0 %v250_v5  ;;  %v167_v17 = vld [vmem:[#allocation2 + $0x3f8] sm:$0xff]  ;;  %v979_v19 = vpack.c.bf16 %v149_v13, %v148_v12  ;;  %v949_v20 = vpack.c.bf16 %v135_v15, %v134_v14  ;;  %v118_v22 = vld [vmem:[#allocation2 + $0x270] sm:$0xff]  ;;  %v543_v32 = vld [vmem:[%s1232_s2 + $0x8] sm:$0xff] }
  0x40   :  { %934 = vmatprep.subr.bf16.mxu0 %v933_v27  ;;  %535 = vmatprep.mubr.f32.mxu1 %v252_v6  ;;  %v119_v23 = vld [vmem:[#allocation2 + $0x278] sm:$0xff]  ;;  %v981_v24 = vpack.c.bf16 %v167_v17, %v166_v16  ;;  %v150_v25 = vld [vmem:[#allocation2 + $0x370] sm:$0xff]  ;;  %v546_v38 = vld [vmem:[%s1232_s2 + $0x20] sm:$0xff] }
  0x41   :  { %964 = vmatpush3.bf16.msra.mxu1 %v963_v26  ;;  %v151_v26 = vld [vmem:[#allocation2 + $0x378] sm:$0xff]  ;;  %v951_v27 = vpack.c.bf16 %v119_v23, %v118_v22  ;;  %v544_v33 = vld [vmem:[%s1232_s2 + $0x10] sm:$0xff]  ;;  %v547_v39 = vld [vmem:[%s1232_s2 + $0x28] sm:$0xff] }
  0x42   :  { %966 = vmatprep.subr.bf16.mxu1 %v965_v31  ;;  %v983_v28 = vpack.c.bf16 %v151_v26, %v150_v25  ;;  %v542_v31 = vld [vmem:[%s1232_s2] sm:$0xff]  ;;  %v545_v36 = vld [vmem:[%s1232_s2 + $0x18] sm:$0xff]  ;;  %v548_v41 = vld [vmem:[%s1232_s2 + $0x30] sm:$0xff] }
  0x43   :  { %936 = vmatpush3.bf16.msra.mxu0 %v935_v40  ;;  %v986_v35 = vpack.c.bf16 %v543_v32, %v542_v31  ;;  %v989_v37 = vpack.c.bf16 %v545_v36, %v544_v33  ;;  %v992_v40 = vpack.c.bf16 %v547_v39, %v546_v38  ;;  %v549_v42 = vld [vmem:[%s1232_s2 + $0x38] sm:$0xff]  ;;  %v552_v47 = vld [vmem:[%s1232_s2 + $0x50] sm:$0xff]  ;;  %v554_v50 = vld [vmem:[%s1232_s2 + $0x60] sm:$0xff] }
  0x44   :  { %938 = vmatprep.subr.bf16.mxu0 %v937_v45  ;;  %v995_v43 = vpack.c.bf16 %v549_v42, %v548_v41  ;;  %v551_v45 = vld [vmem:[%s1232_s2 + $0x48] sm:$0xff]  ;;  %v663_v58 = vld [vmem:[%s1233_s3] ss:$0 sm:$0xff]  ;;  %v664_v11 = vld [vmem:[%s1233_s3 + $0x1] ss:$0 sm:$0xff] }
  0x45   :  { %968 = vmatpush3.bf16.msra.mxu1 %v967_v44  ;;  %v550_v44 = vld [vmem:[%s1232_s2 + $0x40] sm:$0xff]  ;;  %v555_v51 = vld [vmem:[%s1232_s2 + $0x68] sm:$0xff] }
  0x46   :  { %970 = vmatprep.subr.bf16.mxu1 %v969_v48  ;;  %v998_v46 = vpack.c.bf16 %v551_v45, %v550_v44  ;;  %v553_v48 = vld [vmem:[%s1232_s2 + $0x58] sm:$0xff]  ;;  %v1004_v52 = vpack.c.bf16 %v555_v51, %v554_v50 }
  0x47   :  { %940 = vmatpush3.bf16.msra.mxu0 %v939_v53  ;;  %v1001_v49 = vpack.c.bf16 %v553_v48, %v552_v47  ;;  %v556_v53 = vld [vmem:[%s1232_s2 + $0x70] sm:$0xff] }
  0x48   :  { %942 = vmatprep.subr.bf16.mxu0 %v941_v55 }
  0x49   :  { %972 = vmatpush3.bf16.msra.mxu1 %v971_v54  ;;  %v557_v54 = vld [vmem:[%s1232_s2 + $0x78] sm:$0xff] }
  0x4a   :  { %974 = vmatprep.subr.bf16.mxu1 %v973_v63  ;;  %v1007_v55 = vpack.c.bf16 %v557_v54, %v556_v53 }
  0x4b   :  { %944 = vmatpush3.bf16.msra.mxu0 %v943_v7 }
  0x4c   :  { %946 = vmatprep.subr.bf16.mxu0 %v945_v9 }
  0x4d   :  { %976 = vmatpush3.bf16.msra.mxu1 %v975_v8 }
  0x4e   :  { %978 = vmatprep.subr.bf16.mxu1 %v977_v21 }
  0x4f   :  { %948 = vmatpush3.bf16.msra.mxu0 %v947_v18 }
  0x50   :  { %950 = vmatprep.subr.bf16.mxu0 %v949_v20 }
  0x51   :  { %980 = vmatpush3.bf16.msra.mxu1 %v979_v19 }
  0x52   :  { %982 = vmatprep.subr.bf16.mxu1 %v981_v24 }
  0x53   :  { %952 = vmatpush3.bf16.msra.mxu0 %v951_v27 }
  0x54   :  { %985 = vmatprep.subr.bf16.mxu0 %v1087_v34 }
  0x55   :  { %984 = vmatpush3.bf16.msra.mxu1 %v983_v28 }
  0x56   :  { %466 = vmatmul.mubr.f32.vlgmr.msra.gmra.mrb[2].mxu0 %v249_v29 }
  0x57   :  { %987 = vmatpush3.bf16.msra.mxu0 %v986_v35  ;;  %854 = vmatprep.mubr.msk.f32.mxu0 %vm1088_vm0, %v1089_v56 }
  0x58   :  { %536 = vmatmul.mubr.f32.vlgmr.msra.gmra.mrb[2].mxu1 %v251_v30  ;;  %988 = vmatprep.subr.bf16.mxu0 %v1087_v34 }
  0x5b   :  { %990 = vmatpush3.bf16.msra.mxu0 %v989_v37 }
  0x5c   :  { %991 = vmatprep.subr.bf16.mxu0 %v1087_v34 }
  0x5f   :  { %993 = vmatpush3.bf16.msra.mxu0 %v992_v40 }
  0x60   :  { %994 = vmatprep.subr.bf16.mxu0 %v1087_v34 }
  0x63   :  { %996 = vmatpush3.bf16.msra.mxu0 %v995_v43 }
  0x64   :  { %997 = vmatprep.subr.bf16.mxu0 %v1087_v34 }
  0x67   :  { %999 = vmatpush3.bf16.msra.mxu0 %v998_v46 }
  0x68   :  { %1000 = vmatprep.subr.bf16.mxu0 %v1087_v34 }
  0x6b   :  { %1002 = vmatpush3.bf16.msra.mxu0 %v1001_v49 }
  0x6c   :  { %1003 = vmatprep.subr.bf16.mxu0 %v1087_v34 }
  0x6f   :  { %1005 = vmatpush3.bf16.msra.mxu0 %v1004_v52 }
  0x70   :  { %1006 = vmatprep.subr.bf16.mxu0 %v1087_v34 }
  0x73   :  { %1008 = vmatpush3.bf16.msra.mxu0 %v1007_v55 }
 0x109   :  { %v697_v57 = vpop.f32.mrb[0].mxu0 }
 0x10a   :  { %v698_v59 = vpop.f32.mrb[1].mxu0 }
 0x10b   :  { %v732_v60 = vpop.f32.mrb[0].mxu1  ;;  %v699_v61 = vadd.f32 %v698_v59, %v697_v57 }
 0x10c   :  { %v733_v62 = vpop.f32.mrb[1].mxu1 }
 0x10d   :  { %v734_v63 = vadd.f32 %v733_v62, %v732_v60  ;;  %v328_v0 = vadd.f32 %v699_v61, %v663_v58 }
 0x10f   :  { %v398_v1 = vadd.f32 %v734_v63, %v328_v0 }
 0x129   :  { %v767_v2 = vpop.f32.mrb[2].mxu0 }
 0x12a   :  { %v768_v3 = vpop.f32.mrb[3].mxu0 }
 0x12b   :  { %v802_v4 = vpop.f32.mrb[2].mxu1  ;;  %v769_v5 = vadd.f32 %v768_v3, %v767_v2 }
 0x12c   :  { %v803_v6 = vpop.f32.mrb[3].mxu1 }
 0x12d   :  { %v804_v7 = vadd.f32 %v803_v6, %v802_v4  ;;  %v468_v8 = vadd.f32 %v769_v5, %v398_v1 }
 0x12f   :  { %v538_v9 = vadd.f32 %v804_v7, %v468_v8 }
 0x131   :  { %v541_v10 = vmax.f32 %v538_v9, 0.0 }
 0x133   :  { %855 = vmatmul.mubr.f32.vlgmr.msra.gmra.mrb[4].mxu0 %v541_v10 }
 0x206   :  { %v629_v12 = vpop.f32.mrb[4].mxu0 }
 0x207   :  { %v630_v21 = vadd.f32 %v664_v11, %v629_v12  ;;  %v856_v13 = vpop.f32.mrb[5].mxu0 }
 0x209   :  { %633 = vmax.xlane.f32.xlu0 %v630_v21 }
 0x296   :  { %v634_v14 = vpop.xlane.xlu0 %633 }
 0x297   :  { %v635_v15 = vsub.f32 %v630_v21, %v634_v14 }
 0x299   :  { %v636_v16 = vmul.f32 1.442695, %v635_v15 }
 0x29b   :  { %1031 = vpow2.f32 %v636_v16 }
 0x2a5   :  { %v1032_v17 = vpop.eup %1031 }
 0x2a6   :  { %638 = vadd.xlane.f32.xlu0 %v1032_v17 }
 0x333   :  { %v639_v18 = vpop.xlane.xlu0 %638 }
 0x334   :  { %1033 = vrcp.f32 %v639_v18 }
 0x33e   :  { %v1034_v19 = vpop.eup %1033 }
 0x33f   :  { %v641_v20 = vmul.f32 %v1034_v19, %v639_v18 }
 0x341   :  { %v642_v22 = vsub.f32 2.0, %v641_v20 }
 0x343   :  { %v643_v23 = vmul.f32 %v1034_v19, %v642_v22 }
 0x345   :  { %v644_v24 = vmul.f32 %v1032_v17, %v643_v23 }
 0x347   :  { %645 = vst [vmem:[#allocation5] sm:$0xff] %v644_v24 }
 0x348   :  { %650 = vsyncadd [#allocation4], 96  ;;  %s1090_s3 = smov [#allocation5]  }
 0x349   :  { %s651_s24 = sshll.u32 %s1090_s3, 4  ;;  %s652_s24 = int_to_ptr.vmem [resolvable:$true] %s651_s24 }
 0x34a   :  { %s1057_s25 = scalar_lea.vmem %s652_s24, 32  ;;  %s1061_s26 = scalar_lea.vmem %s652_s24, 128 }
 0x34b   :  { %p1058_p8 = scmp.ne.s32.totalorder %s652_s24, %s1057_s25  ;;  %p1062_p9 = scmp.lt.s32.totalorder %s652_s24, %s652_s24 }
 0x34c   :  { %p1063_p10 = scmp.lt.s32.totalorder %s1061_s26, %s1057_s25 }
 0x34e   :  { %p1064_p11 = por %p1063_p10, %p1062_p9 }
 0x350   :  { %p1065_p12 = pnand %p1064_p11, %p1058_p8 }
 0x352   :  { %1068 = shalt.err (!%p1065_p12)
}
 0x353   :  { %s1069_s1 = scalar_lea.hbm %s1234_s4, 32 }
 0x354   :  { %p1070_p13 = scmp.ne.s32.totalorder %s1234_s4, %s1069_s1  ;;  %p1073_p0 = scmp.lt.u32.totalorder %s1069_s1, %s1234_s4 }
 0x356   :  { %p1075_p1 = pnand %p1073_p0, %p1070_p13 }
 0x358   :  { %1078 = shalt.err (!%p1075_p1)
}
 0x359   :  { %s1091_s7 = smov 32   ;;  %s1092_s8 = smov 2  }
 0x35a   :  { %657 = dma.vmem_to_hbm [thread:$0]  %s652_s24, 32, %s1234_s4, [#allocation4], %s1091_s7, %s1091_s7, %s1092_s8  }
 0x35b   :  { %1081 = dma.done.wait [#allocation4], 128  }
 0x35c   :  { %1082 = vsyncadd [#allocation4], 4294967168 }
 0x35d   :  { %661 = vsyncpa [#allocation3], 1 }
 0x35e   :  { %662 = vsyncpa [#allocation4], 1 }

</bundles_post_ra>
